<compile_context>
chip_gen: v6e
topology: v6e:2x2x1
jax: 0.10.0
libtpu: 0.0.40
codegen_flags: <defaults>
</compile_context>

<pallas_src>
import math
import jax
import jax.numpy as jnp
from jax import lax
from jax.experimental import pallas as pl
from jax.experimental.pallas import tpu as pltpu


def _round_up(x, m):
    return ((x + m - 1) // m) * m


def _pooler_kernel(x_ref, w_ref, b_ref, o_ref):
    # x_ref: (TM, Hp)   w_ref: (Hp, Hp) torch (out, in) layout   b_ref: (1, Hp)
    x = x_ref[...]
    w = w_ref[...]
    # out = x @ w.T with f32 accumulation on the MXU (no wrapper-side transpose,
    # no upcast of bf16 operands).
    y = lax.dot_general(
        x, w,
        dimension_numbers=(((1,), (1,)), ((), ())),
        preferred_element_type=jnp.float32,
    )
    y = y + b_ref[...].astype(jnp.float32)
    # Exact GELU (matches torch.nn.GELU() default): 0.5*y*(1+erf(y/sqrt(2)))
    inv_sqrt2 = jnp.float32(1.0 / math.sqrt(2.0))
    out = 0.5 * y * (1.0 + lax.erf(y * inv_sqrt2))
    o_ref[...] = out.astype(o_ref.dtype)


def bert_pooler(x, weight, bias, *, row_tile=512):
    """x: (B, S, H); weight: (H_out, H_in) torch convention; bias: (H_out,)."""
    B, S, H = x.shape
    M = B * S
    x2 = x.reshape(M, H)

    # Lane-dense feature dim and sublane-aligned row tiling.
    Hp = _round_up(H, 128)
    TM = _round_up(min(row_tile, _round_up(M, 8)), 8)
    Mp = _round_up(M, TM)

    if Mp != M or Hp != H:
        x2 = jnp.pad(x2, ((0, Mp - M), (0, Hp - H)))
    wp = jnp.pad(weight, ((0, Hp - H), (0, Hp - H))) if Hp != H else weight
    bp = (jnp.pad(bias, (0, Hp - H)) if Hp != H else bias).reshape(1, Hp)

    grid = (Mp // TM,)
    out2 = pl.pallas_call(
        _pooler_kernel,
        out_shape=jax.ShapeDtypeStruct((Mp, Hp), x.dtype),
        grid_spec=pltpu.PrefetchScalarGridSpec(
            num_scalar_prefetch=0,
            grid=grid,
            in_specs=[
                pl.BlockSpec((TM, Hp), lambda i: (i, 0)),   # row tile of x
                pl.BlockSpec((Hp, Hp), lambda i: (0, 0)),   # resident weight
                pl.BlockSpec((1, Hp), lambda i: (0, 0)),    # resident bias
            ],
            out_specs=pl.BlockSpec((TM, Hp), lambda i: (i, 0)),
        ),
        compiler_params=pltpu.CompilerParams(
            dimension_semantics=("parallel",),   # megacore-splittable row tiles
            vmem_limit_bytes=48 * 1024 * 1024,   # safe on v7x (64 MiB physical)
        ),
    )(x2, wp, bp)
    return out2[:M, :H].reshape(B, S, H)


def _reference(x, weight, bias):
    return jax.nn.gelu(x @ weight.T + bias, approximate=False)


if __name__ == "__main__":
    key = jax.random.PRNGKey(0)
    kx, kw, kb, kx2 = jax.random.split(key, 4)

    # Small shapes consistent with the module: batch=2, seq=8, hidden=32.
    B, S, H = 2, 8, 32
    bound = 1.0 / math.sqrt(H)
    x = jax.random.normal(kx, (B, S, H), dtype=jnp.float32)
    weight = jax.random.uniform(kw, (H, H), minval=-bound, maxval=bound,
                                dtype=jnp.float32)   # torch (out, in) layout
    bias = jax.random.uniform(kb, (H,), minval=-bound, maxval=bound,
                              dtype=jnp.float32)

    out = jax.block_until_ready(bert_pooler(x, weight, bias))
    ref = _reference(x, weight, bias)
    assert out.shape == (B, S, H)
    assert jnp.allclose(out, ref, atol=2e-5, rtol=1e-5)

    # Ragged row count (M = 21, not a multiple of 8) exercises row padding/tiling.
    B2, S2 = 3, 7
    x_ragged = jax.random.normal(kx2, (B2, S2, H), dtype=jnp.float32)
    out2 = jax.block_until_ready(bert_pooler(x_ragged, weight, bias))
    ref2 = _reference(x_ragged, weight, bias)
    assert out2.shape == (B2, S2, H)
    assert jnp.allclose(out2, ref2, atol=2e-5, rtol=1e-5)

    print("KERNEL_OK")
</pallas_src>

<mosaic_0001>
module attributes {stable_mosaic.version = 11 : i64} {
  func.func @_pooler_kernel(%arg0: i32, %arg1: memref<16x128xf32, #tpu.memory_space<vmem>>, %arg2: memref<128x128xf32, #tpu.memory_space<vmem>>, %arg3: memref<1x128xf32, #tpu.memory_space<vmem>>, %arg4: memref<16x128xf32, #tpu.memory_space<vmem>>) attributes {dimension_semantics = [#tpu.dimension_semantics<parallel>], iteration_bounds = array<i64: 1>, scalar_prefetch = 0 : i64, scratch_operands = 0 : i64, tpu.core_type = #tpu.core_type<tc>, window_params = [{transform_indices = @transform_0, window_bounds = array<i64: 16, 128>}, {pipeline_mode = #tpu.pipeline_mode<synchronous>, transform_indices = @transform_1, window_bounds = array<i64: 128, 128>}, {pipeline_mode = #tpu.pipeline_mode<synchronous>, transform_indices = @transform_2, window_bounds = array<i64: 1, 128>}, {transform_indices = @transform_3, window_bounds = array<i64: 16, 128>}]} {
    %c0 = arith.constant 0 : index
    %c0_0 = arith.constant 0 : index
    %0 = vector.load %arg1[%c0, %c0_0] : memref<16x128xf32, #tpu.memory_space<vmem>>, vector<16x128xf32>
    %c0_1 = arith.constant 0 : index
    %c0_2 = arith.constant 0 : index
    %1 = vector.load %arg2[%c0_1, %c0_2] : memref<128x128xf32, #tpu.memory_space<vmem>>, vector<128x128xf32>
    %cst = arith.constant dense<0.000000e+00> : vector<16x128xf32>
    %2 = tpu.matmul %0, %1, %cst {dimension_numbers = #tpu.dot_dimension_numbers<[1], [1], [0], [0], [0, 0, 1, 0], [], []>} : vector<16x128xf32>, vector<128x128xf32>, vector<16x128xf32> -> vector<16x128xf32>
    %c0_3 = arith.constant 0 : index
    %c0_4 = arith.constant 0 : index
    %3 = vector.load %arg3[%c0_3, %c0_4] : memref<1x128xf32, #tpu.memory_space<vmem>>, vector<1x128xf32>
    %4 = vector.broadcast %3 : vector<1x128xf32> to vector<16x128xf32>
    %5 = arith.addf %2, %4 : vector<16x128xf32>
    %cst_5 = arith.constant 5.000000e-01 : f32
    %6 = vector.broadcast %cst_5 : f32 to vector<16x128xf32>
    %7 = arith.mulf %6, %5 : vector<16x128xf32>
    %cst_6 = arith.constant 0.707106769 : f32
    %8 = vector.broadcast %cst_6 : f32 to vector<16x128xf32>
    %9 = arith.mulf %5, %8 : vector<16x128xf32>
    %10 = math.erf %9 : vector<16x128xf32>
    %cst_7 = arith.constant 1.000000e+00 : f32
    %11 = vector.broadcast %cst_7 : f32 to vector<16x128xf32>
    %12 = arith.addf %11, %10 : vector<16x128xf32>
    %13 = arith.mulf %7, %12 : vector<16x128xf32>
    %c0_8 = arith.constant 0 : index
    %c0_9 = arith.constant 0 : index
    %14 = vector.load %arg4[%c0_8, %c0_9] : memref<16x128xf32, #tpu.memory_space<vmem>>, vector<16x128xf32>
    tpu.vector_store %arg4[%c0_8, %c0_9], %13 {strides = array<i32>} : memref<16x128xf32, #tpu.memory_space<vmem>>, vector<16x128xf32>,
    return
  }
  func.func @transform_0(%arg0: i32) -> (i32, i32) {
    %c0_i32 = arith.constant 0 : i32
    %c0_i32_0 = arith.constant 0 : i32
    return %arg0, %c0_i32 : i32, i32
  }
  func.func @transform_1(%arg0: i32) -> (i32, i32) {
    %c0_i32 = arith.constant 0 : i32
    %c0_i32_0 = arith.constant 0 : i32
    %c0_i32_1 = arith.constant 0 : i32
    return %c0_i32, %c0_i32_0 : i32, i32
  }
  func.func @transform_2(%arg0: i32) -> (i32, i32) {
    %c0_i32 = arith.constant 0 : i32
    %c0_i32_0 = arith.constant 0 : i32
    %c0_i32_1 = arith.constant 0 : i32
    return %c0_i32, %c0_i32_0 : i32, i32
  }
  func.func @transform_3(%arg0: i32) -> (i32, i32) {
    %c0_i32 = arith.constant 0 : i32
    %c0_i32_0 = arith.constant 0 : i32
    return %arg0, %c0_i32 : i32, i32
  }
}

</mosaic_0001>

<bundles_post_ra>
// kernel: tpu_custom_call.1
= control target key start
LH: loop header
LB: loop body
LE: loop exit
PB: predicated region body
PF: predicated region fallthrough
CT: control target
= control target key end

     0   :  { %8 = vsyncpa [#allocation3], 0  ;;  %s348_s0 = inlined_call_operand.hbm [shape: f32[16,128], index: 0, kind: input, shape index: {}]   ;;  %s349_s1 = inlined_call_operand.hbm [shape: f32[128,128], index: 1, kind: input, shape index: {}]   ;;  %s350_s2 = inlined_call_operand.vmem [shape: f32[1,128], index: 2, kind: input, shape index: {}]   ;;  %s351_s3 = inlined_call_operand.hbm [shape: f32[16,128], index: 3, kind: output, shape index: {}]  }
   0x1   :  { %9 = vsyncpa [#allocation6], 0 }
   0x2   :  { %10 = vsyncpa [#allocation4], 0  ;;  %s302_s12 = smov [#allocation2]  }
   0x3   :  { %s16_s13 = sshll.u32 %s302_s12, 4  ;;  %s17_s13 = int_to_ptr.vmem [resolvable:$true] %s16_s13 }
   0x4   :  { %s244_s14 = scalar_lea.vmem %s17_s13, 256  ;;  %p249_p1 = scmp.lt.s32.totalorder %s17_s13, %s17_s13 }
   0x5   :  { %p245_p0 = scmp.ne.s32.totalorder %s17_s13, %s244_s14  ;;  %p250_p2 = scmp.lt.s32.totalorder %s244_s14, %s244_s14 }
   0x7   :  { %p251_p3 = por %p250_p2, %p249_p1 }
   0x9   :  { %p252_p4 = pnand %p251_p3, %p245_p0 }
   0xb   :  { %255 = shalt.err (!%p252_p4)
}
   0xc   :  { %s303_s15 = smov 128   ;;  %s304_s16 = smov 8  }
   0xd   :  { %22 = dma.hbm_to_vmem [thread:$0]  %s348_s0, 256, %s17_s13, [#allocation3], %s303_s15, %s303_s15, %s304_s16  }
   0xe   :  { %s305_s19 = smov [#allocation5]  }
   0xf   :  { %s28_s20 = sshll.u32 %s305_s19, 4  ;;  %s29_s20 = int_to_ptr.vmem [resolvable:$true] %s28_s20 }
  0x10   :  { %s264_s21 = scalar_lea.vmem %s29_s20, 2048  ;;  %p269_p6 = scmp.lt.s32.totalorder %s29_s20, %s29_s20 }
  0x11   :  { %p265_p5 = scmp.ne.s32.totalorder %s29_s20, %s264_s21  ;;  %p270_p7 = scmp.lt.s32.totalorder %s264_s21, %s264_s21 }
  0x13   :  { %p271_p8 = por %p270_p7, %p269_p6 }
  0x15   :  { %p272_p9 = pnand %p271_p8, %p265_p5 }
  0x17   :  { %275 = shalt.err (!%p272_p9)
}
  0x18   :  { %34 = dma.hbm_to_vmem [thread:$0]  %s349_s1, 2048, %s29_s20, [#allocation6], %s303_s15, %s303_s15, %s304_s16  }
  0x19   :  { %296 = dma.done.wait [#allocation3], 256  }
  0x1a   :  { %297 = vsyncadd [#allocation3], 4294967040 }
  0x1b   :  { %298 = dma.done.wait [#allocation6], 2048  }
  0x1c   :  { %299 = vsyncadd [#allocation6], 4294965248  ;;  %v60_v0 = vld [vmem:[#allocation5 + $0x78] sm:$0xff]  ;;  %v59_v1 = vld [vmem:[#allocation5 + $0x70] sm:$0xff]  ;;  %s306_s24 = smov [#allocation7]  }
  0x1d   :  { %192 = vmatprep.subr.mxu0 %v60_v0  ;;  %v58_v2 = vld [vmem:[#allocation5 + $0x68] sm:$0xff]  ;;  %v43_v3 = vld [vmem:[#allocation2] sm:$0xff]  ;;  %v57_v4 = vld [vmem:[#allocation5 + $0x60] sm:$0xff]  ;;  %s160_s25 = sshll.u32 %s306_s24, 4  ;;  %s161_s25 = int_to_ptr.vmem [resolvable:$true] %s160_s25 }
  0x1e   :  { %193 = vmatpush3.xpose.msra.mxu0 %v60_v0  ;;  %224 = vmatprep.mubr.f32.mxu0 %v43_v3  ;;  %v56_v5 = vld [vmem:[#allocation5 + $0x58] sm:$0xff]  ;;  %v55_v6 = vld [vmem:[#allocation5 + $0x50] sm:$0xff]  ;;  %v54_v7 = vld [vmem:[#allocation5 + $0x48] sm:$0xff]  ;;  %p281_p11 = scmp.lt.s32.totalorder %s161_s25, %s161_s25 }
  0x1f   :  { %194 = vmatprep.subr.mxu0 %v59_v1  ;;  %v53_v8 = vld [vmem:[#allocation5 + $0x40] sm:$0xff]  ;;  %v52_v9 = vld [vmem:[#allocation5 + $0x38] sm:$0xff]  ;;  %v51_v10 = vld [vmem:[#allocation5 + $0x30] sm:$0xff] }
  0x20   :  { %v50_v11 = vld [vmem:[#allocation5 + $0x28] sm:$0xff]  ;;  %v49_v12 = vld [vmem:[#allocation5 + $0x20] sm:$0xff]  ;;  %v48_v13 = vld [vmem:[#allocation5 + $0x18] sm:$0xff] }
  0x21   :  { %v47_v14 = vld [vmem:[#allocation5 + $0x10] sm:$0xff]  ;;  %v46_v15 = vld [vmem:[#allocation5 + $0x8] sm:$0xff]  ;;  %v45_v16 = vld [vmem:[#allocation5] sm:$0xff] }
  0x22   :  { %195 = vmatpush3.xpose.msra.mxu0 %v59_v1  ;;  %v44_v17 = vld [vmem:[#allocation2 + $0x8] sm:$0xff]  ;;  %v173_v18 = vld [vmem:[%s350_s2] ss:$0 sm:$0xff]  ;;  %s276_s2 = scalar_lea.vmem %s161_s25, 256 }
  0x23   :  { %196 = vmatprep.subr.mxu0 %v58_v2  ;;  %p277_p10 = scmp.ne.s32.totalorder %s161_s25, %s276_s2  ;;  %p282_p12 = scmp.lt.s32.totalorder %s276_s2, %s276_s2 }
  0x25   :  { %p283_p13 = por %p282_p12, %p281_p11 }
  0x26   :  { %197 = vmatpush3.xpose.msra.mxu0 %v58_v2 }
  0x27   :  { %198 = vmatprep.subr.mxu0 %v57_v4  ;;  %p284_p0 = pnand %p283_p13, %p277_p10 }
  0x2a   :  { %199 = vmatpush3.xpose.msra.mxu0 %v57_v4 }
  0x2b   :  { %200 = vmatprep.subr.mxu0 %v56_v5 }
  0x2e   :  { %201 = vmatpush3.xpose.msra.mxu0 %v56_v5 }
  0x2f   :  { %202 = vmatprep.subr.mxu0 %v55_v6 }
  0x32   :  { %203 = vmatpush3.xpose.msra.mxu0 %v55_v6 }
  0x33   :  { %204 = vmatprep.subr.mxu0 %v54_v7 }
  0x36   :  { %205 = vmatpush3.xpose.msra.mxu0 %v54_v7 }
  0x37   :  { %206 = vmatprep.subr.mxu0 %v53_v8 }
  0x3a   :  { %207 = vmatpush3.xpose.msra.mxu0 %v53_v8 }
  0x3b   :  { %208 = vmatprep.subr.mxu0 %v52_v9 }
  0x3e   :  { %209 = vmatpush3.xpose.msra.mxu0 %v52_v9 }
  0x3f   :  { %210 = vmatprep.subr.mxu0 %v51_v10 }
  0x42   :  { %211 = vmatpush3.xpose.msra.mxu0 %v51_v10 }
  0x43   :  { %212 = vmatprep.subr.mxu0 %v50_v11 }
  0x46   :  { %213 = vmatpush3.xpose.msra.mxu0 %v50_v11 }
  0x47   :  { %214 = vmatprep.subr.mxu0 %v49_v12 }
  0x4a   :  { %215 = vmatpush3.xpose.msra.mxu0 %v49_v12 }
  0x4b   :  { %216 = vmatprep.subr.mxu0 %v48_v13 }
  0x4e   :  { %217 = vmatpush3.xpose.msra.mxu0 %v48_v13 }
  0x4f   :  { %218 = vmatprep.subr.mxu0 %v47_v14 }
  0x52   :  { %219 = vmatpush3.xpose.msra.mxu0 %v47_v14 }
  0x53   :  { %220 = vmatprep.subr.mxu0 %v46_v15 }
  0x56   :  { %221 = vmatpush3.xpose.msra.mxu0 %v46_v15 }
  0x57   :  { %222 = vmatprep.subr.mxu0 %v45_v16 }
  0x5a   :  { %223 = vmatpush3.xpose.msra.mxu0 %v45_v16 }
  0x5d   :  { %225 = vmatmul.mubr.f32.vlgmr.msra.gmra.mxu0 %v44_v17 }
 0x11d   :  { %v226_v19 = vpop.f32.mrf.mxu0 }
 0x11e   :  { %v140_v20 = vadd.f32 %v226_v19, %v173_v18 }
 0x11f   :  { %v134_v21 = vpop.f32.mrf.mxu0 }
 0x120   :  { %v146_v22 = vmul.f32 0.70710677, %v140_v20  ;;  %v135_v23 = vadd.f32 %v173_v18, %v134_v21  ;;  %v144_v26 = vmul.f32 0.5, %v140_v20 }
 0x122   :  { %232 = verf.f32 %v146_v22  ;;  %v145_v24 = vmul.f32 0.70710677, %v135_v23  ;;  %v143_v30 = vmul.f32 0.5, %v135_v23 }
 0x124   :  { %234 = verf.f32 %v145_v24 }
 0x12f   :  { %v233_v25 = vpop.eup %232 }
 0x130   :  { %v150_v27 = vadd.f32 1.0, %v233_v25 }
 0x131   :  { %v235_v28 = vpop.eup %234 }
 0x132   :  { %v152_v29 = vmul.f32 %v150_v27, %v144_v26  ;;  %v149_v31 = vadd.f32 1.0, %v235_v28 }
 0x134   :  { %154 = vst [vmem:[#allocation7 + $0x8] sm:$0xff] %v152_v29  ;;  %v151_v32 = vmul.f32 %v149_v31, %v143_v30 }
 0x136   :  { %153 = vst [vmem:[#allocation7] sm:$0xff] %v151_v32 }
 0x137   :  { %287 = shalt.err (!%p284_p0)
}
 0x138   :  { %166 = dma.vmem_to_hbm [thread:$0]  %s161_s25, 256, %s351_s3, [#allocation4], %s303_s15, %s303_s15, %s304_s16  }
 0x139   :  { %300 = dma.done.wait [#allocation4], 256  }
 0x13a   :  { %301 = vsyncadd [#allocation4], 4294967040 }
 0x13b   :  { %170 = vsyncpa [#allocation3], 1 }
 0x13c   :  { %171 = vsyncpa [#allocation6], 1 }
 0x13d   :  { %172 = vsyncpa [#allocation4], 1 }

</bundles_post_ra>
